<compile_context>
chip_gen: v7x
topology: tpu7x:2x2x1
jax: 0.10.0
libtpu: 0.0.40
codegen_flags: <defaults>
</compile_context>

<pallas_src>
import jax
import jax.numpy as jnp
from jax.experimental import pallas as pl
from jax.experimental.pallas import tpu as pltpu


def sae_kernel(x_ref, we_ref, be_ref, wd_ref, bd_ref, lat_ref, rec_ref):
    """One (batch-tile i, hidden-tile j) step of the fused SAE forward."""
    j = pl.program_id(1)  # hidden axis (decoder reduction axis)

    # Encoder tile: h = relu(x @ W_enc[:, j*TN:(j+1)*TN] + b_enc[j*TN:(j+1)*TN])
    h = jnp.dot(x_ref[...], we_ref[...], preferred_element_type=jnp.float32)
    h = jnp.maximum(h + be_ref[...], 0.0)
    lat_ref[...] = h.astype(lat_ref.dtype)

    # Decoder: the recon output block index is (i, 0) for all j, so the block
    # stays resident in VMEM across the hidden axis and doubles as the f32
    # accumulator (no extra scratch).  b_dec is added exactly once at j == 0.
    @pl.when(j == 0)
    def _():
        rec_ref[...] = jnp.broadcast_to(bd_ref[...], rec_ref.shape).astype(rec_ref.dtype)

    rec_ref[...] += jnp.dot(
        h.astype(wd_ref.dtype), wd_ref[...], preferred_element_type=jnp.float32
    ).astype(rec_ref.dtype)


def _vmem_capacity_bytes():
    """Chip VMEM capacity; conservative 64 MiB fallback (safe on all parts)."""
    try:
        info = pltpu.get_tpu_info()
        cap = getattr(info, "vmem_capacity_bytes", None)
        if cap:
            return int(cap)
    except Exception:
        pass
    return 64 * 1024 * 1024


def _choose_tile(dim, preferred, aligns=(256, 128, 16, 8)):
    """Largest divisor of `dim` that is <= preferred and a multiple of the
    coarsest alignment possible; falls back to the full dim."""
    preferred = min(preferred, dim)
    for align in aligns:
        best = None
        t = align
        while t <= preferred:
            if dim % t == 0:
                best = t
            t += align
        if best is not None:
            return best
    return dim


def _tile_vmem_bytes(tm, tn, d_in, in_item, lat_item, rec_item):
    """Conservative VMEM footprint: everything double-buffered."""
    b = 0
    b += 2 * tm * d_in * in_item      # x tile
    b += 2 * d_in * tn * in_item      # W_enc column block
    b += 2 * tn * d_in * in_item      # W_dec row block
    b += 2 * (tn + d_in) * 4          # biases (f32)
    b += 2 * tm * tn * lat_item       # latent output tile
    b += 2 * tm * d_in * rec_item     # recon output tile (f32 accumulator)
    return b


def sparse_autoencoder_forward(
    x,
    w_enc,
    b_enc,
    w_dec,
    b_dec,
    *,
    tm=None,
    tn=None,
    compute_dtype=jnp.bfloat16,
    latent_dtype=jnp.bfloat16,
):
    """Fused SAE forward: (latent, reconstruction).

    latent = relu(x @ W_enc + b_enc)   (written in `latent_dtype`)
    recon  = latent @ W_dec + b_dec    (accumulated & written in float32)

    Tiled over (batch, hidden); the reconstruction tile is accumulated in its
    resident VMEM output block across the hidden axis so the latent never
    re-enters HBM.
    """
    B, D_in = x.shape
    D_hid = w_enc.shape[1]

    # Normalize bias shapes to (1, D).
    b_enc = jnp.asarray(b_enc).reshape(1, D_hid)
    b_dec = jnp.asarray(b_dec).reshape(1, D_in)

    in_item = jnp.dtype(compute_dtype).itemsize
    lat_item = jnp.dtype(latent_dtype).itemsize
    rec_item = 4  # recon is accumulated and written in float32

    vmem_cap = _vmem_capacity_bytes()
    vmem_budget = vmem_cap - 8 * 1024 * 1024

    # Generation-aware tile targets (arithmetic intensity ~= TM flops/byte of
    # weight traffic): v5e needs ~240, v7x ~310, v6e ~650 to be MXU-bound.
    if vmem_cap >= 96 * 1024 * 1024:       # 128 MiB parts (v5e / v6e)
        tm_pref, tn_pref = 1024, 512
    else:                                   # 64 MiB per-TC parts (v7x)
        tm_pref, tn_pref = 512, 256
        if B >= 2 * 256:
            # Keep >= 2 batch tiles so both TensorCores get work.
            tm_pref = min(tm_pref, B // 2)

    if tn is None:
        tn = _choose_tile(D_hid, tn_pref, aligns=(256, 128))
    if tm is None:
        tm = _choose_tile(B, tm_pref)
        # Shrink tiles until the (double-buffered) tile set fits VMEM.
        while _tile_vmem_bytes(tm, tn, D_in, in_item, lat_item, rec_item) > vmem_budget:
            new_tm = _choose_tile(B, max(8, tm // 2))
            if new_tm < tm:
                tm = new_tm
                continue
            new_tn = _choose_tile(D_hid, max(128, tn // 2), aligns=(256, 128))
            if new_tn < tn:
                tn = new_tn
                continue
            break  # cannot shrink further (tiny problem); proceed anyway
    assert B % tm == 0 and D_hid % tn == 0

    # Cast matmul operands; keep biases (and accumulation) in f32.
    xc = x.astype(compute_dtype)
    we = w_enc.astype(compute_dtype)
    wd = w_dec.astype(compute_dtype)
    be = b_enc.astype(jnp.float32)
    bd = b_dec.astype(jnp.float32)

    grid = (B // tm, D_hid // tn)

    in_specs = [
        pl.BlockSpec((tm, D_in), lambda i, j: (i, 0)),   # x tile (resident across j)
        pl.BlockSpec((D_in, tn), lambda i, j: (0, j)),   # W_enc column block
        pl.BlockSpec((1, tn), lambda i, j: (0, j)),      # b_enc slice
        pl.BlockSpec((tn, D_in), lambda i, j: (j, 0)),   # W_dec row block
        pl.BlockSpec((1, D_in), lambda i, j: (0, 0)),    # b_dec (resident)
    ]
    out_specs = [
        pl.BlockSpec((tm, tn), lambda i, j: (i, j)),     # latent
        pl.BlockSpec((tm, D_in), lambda i, j: (i, 0)),   # recon (same block for all j)
    ]

    # VMEM limit: track the actual requirement (+ headroom), never exceed chip
    # capacity minus a safety margin, floor at 32 MiB.
    tile_bytes = _tile_vmem_bytes(tm, tn, D_in, in_item, lat_item, rec_item)
    vmem_limit = int(
        max(32 * 1024 * 1024,
            min(vmem_cap - 4 * 1024 * 1024, int(tile_bytes * 1.25) + (2 << 20)))
    )

    n_batch_tiles = B // tm
    cost = pl.CostEstimate(
        flops=4 * B * D_in * D_hid,  # encoder + decoder matmuls
        transcendentals=0,
        bytes_accessed=int(
            B * D_in * in_item                                         # x
            + n_batch_tiles * (D_in * D_hid + D_hid * D_in) * in_item  # weights, re-read per batch tile
            + (D_hid + D_in) * 4                                       # biases
            + B * D_hid * lat_item                                     # latent write
            + B * D_in * rec_item                                      # recon write
        ),
    )

    latent, recon = pl.pallas_call(
        sae_kernel,
        out_shape=(
            jax.ShapeDtypeStruct((B, D_hid), latent_dtype),
            jax.ShapeDtypeStruct((B, D_in), jnp.float32),
        ),
        grid_spec=pltpu.PrefetchScalarGridSpec(
            num_scalar_prefetch=0,
            grid=grid,
            in_specs=in_specs,
            out_specs=out_specs,
        ),
        compiler_params=pltpu.CompilerParams(
            dimension_semantics=("parallel", "arbitrary"),
            vmem_limit_bytes=vmem_limit,
        ),
        cost_estimate=cost,
    )(xc, we, be, wd, bd)
    return latent, recon


def _reference(x, w_enc, b_enc, w_dec, b_dec, compute_dtype):
    xc = x.astype(compute_dtype)
    we = w_enc.astype(compute_dtype)
    wd = w_dec.astype(compute_dtype)
    h = jnp.dot(xc, we, preferred_element_type=jnp.float32) + b_enc.reshape(1, -1)
    h = jnp.maximum(h, 0.0)
    r = jnp.dot(h.astype(compute_dtype), wd, preferred_element_type=jnp.float32)
    r = r + b_dec.reshape(1, -1)
    return h, r


if __name__ == "__main__":
    # Small deterministic setup; large enough to exercise the tiled grid and
    # the hidden-axis in-place reconstruction accumulation.
    batch, input_dim, hidden_dim = 32, 256, 512

    key = jax.random.PRNGKey(0)
    kx, k1, k2, k3, k4 = jax.random.split(key, 5)

    x = jax.random.normal(kx, (batch, input_dim), dtype=jnp.float32)

    # Deterministic parameter init (PyTorch-Linear-style uniform fan-in scaling).
    lim_e = 1.0 / (input_dim ** 0.5)
    lim_d = 1.0 / (hidden_dim ** 0.5)
    w_enc = jax.random.uniform(k1, (input_dim, hidden_dim), jnp.float32, -lim_e, lim_e)
    b_enc = jax.random.uniform(k2, (hidden_dim,), jnp.float32, -lim_e, lim_e)
    w_dec = jax.random.uniform(k3, (hidden_dim, input_dim), jnp.float32, -lim_d, lim_d)
    b_dec = jax.random.uniform(k4, (input_dim,), jnp.float32, -lim_d, lim_d)

    lat_ref, rec_ref = _reference(x, w_enc, b_enc, w_dec, b_dec, jnp.bfloat16)

    # 1) Explicit small tiles -> grid (2, 4): exercises both grid axes and the
    #    resident-output accumulation across the hidden axis.
    latent, recon = sparse_autoencoder_forward(
        x, w_enc, b_enc, w_dec, b_dec, tm=16, tn=128
    )
    jax.block_until_ready((latent, recon))
    assert latent.shape == (batch, hidden_dim) and recon.shape == (batch, input_dim)
    assert jnp.allclose(latent.astype(jnp.float32), lat_ref, atol=2e-2, rtol=2e-2)
    assert jnp.allclose(recon, rec_ref, atol=2e-2, rtol=2e-2)

    # 2) Auto (generation-aware) tiles: verifies the default tiling path.
    latent2, recon2 = sparse_autoencoder_forward(x, w_enc, b_enc, w_dec, b_dec)
    jax.block_until_ready((latent2, recon2))
    assert jnp.allclose(latent2.astype(jnp.float32), lat_ref, atol=2e-2, rtol=2e-2)
    assert jnp.allclose(recon2, rec_ref, atol=2e-2, rtol=2e-2)

    print("KERNEL_OK")
</pallas_src>

<mosaic_0001>
module attributes {stable_mosaic.version = 11 : i64} {
  func.func @sae_kernel(%arg0: i32, %arg1: i32, %arg2: memref<16x256xbf16, #tpu.memory_space<vmem>>, %arg3: memref<256x128xbf16, #tpu.memory_space<vmem>>, %arg4: memref<1x128xf32, #tpu.memory_space<vmem>>, %arg5: memref<128x256xbf16, #tpu.memory_space<vmem>>, %arg6: memref<1x256xf32, #tpu.memory_space<vmem>>, %arg7: memref<16x128xbf16, #tpu.memory_space<vmem>>, %arg8: memref<16x256xf32, #tpu.memory_space<vmem>>) attributes {dimension_semantics = [#tpu.dimension_semantics<parallel>, #tpu.dimension_semantics<arbitrary>], iteration_bounds = array<i64: 2, 4>, scalar_prefetch = 0 : i64, scratch_operands = 0 : i64, tpu.core_type = #tpu.core_type<tc>, window_params = [{transform_indices = @transform_0, window_bounds = array<i64: 16, 256>}, {transform_indices = @transform_1, window_bounds = array<i64: 256, 128>}, {transform_indices = @transform_2, window_bounds = array<i64: 1, 128>}, {transform_indices = @transform_3, window_bounds = array<i64: 128, 256>}, {pipeline_mode = #tpu.pipeline_mode<synchronous>, transform_indices = @transform_4, window_bounds = array<i64: 1, 256>}, {transform_indices = @transform_5, window_bounds = array<i64: 16, 128>}, {transform_indices = @transform_6, window_bounds = array<i64: 16, 256>}]} {
    %c0 = arith.constant 0 : index
    %c0_0 = arith.constant 0 : index
    %0 = vector.load %arg2[%c0, %c0_0] : memref<16x256xbf16, #tpu.memory_space<vmem>>, vector<16x256xbf16>
    %c0_1 = arith.constant 0 : index
    %c0_2 = arith.constant 0 : index
    %1 = vector.load %arg3[%c0_1, %c0_2] : memref<256x128xbf16, #tpu.memory_space<vmem>>, vector<256x128xbf16>
    %cst = arith.constant dense<0.000000e+00> : vector<16x128xf32>
    %2 = tpu.matmul %0, %1, %cst {dimension_numbers = #tpu.dot_dimension_numbers<[1], [0], [0], [1], [0, 0, 1, 1], [], []>} : vector<16x256xbf16>, vector<256x128xbf16>, vector<16x128xf32> -> vector<16x128xf32>
    %c0_3 = arith.constant 0 : index
    %c0_4 = arith.constant 0 : index
    %3 = vector.load %arg4[%c0_3, %c0_4] : memref<1x128xf32, #tpu.memory_space<vmem>>, vector<1x128xf32>
    %4 = vector.broadcast %3 : vector<1x128xf32> to vector<16x128xf32>
    %5 = arith.addf %2, %4 : vector<16x128xf32>
    %cst_5 = arith.constant 0.000000e+00 : f32
    %6 = vector.broadcast %cst_5 : f32 to vector<16x128xf32>
    %7 = arith.maximumf %5, %6 : vector<16x128xf32>
    %8 = arith.truncf %7 : vector<16x128xf32> to vector<16x128xbf16>
    %c0_6 = arith.constant 0 : index
    %c0_7 = arith.constant 0 : index
    %9 = vector.load %arg7[%c0_6, %c0_7] : memref<16x128xbf16, #tpu.memory_space<vmem>>, vector<16x128xbf16>
    tpu.vector_store %arg7[%c0_6, %c0_7], %8 {strides = array<i32>} : memref<16x128xbf16, #tpu.memory_space<vmem>>, vector<16x128xbf16>,
    %c0_i32 = arith.constant 0 : i32
    %10 = arith.cmpi eq, %arg1, %c0_i32 : i32
    %11 = arith.extui %10 : i1 to i32
    %c0_i32_8 = arith.constant 0 : i32
    %12 = arith.cmpi ne, %11, %c0_i32_8 : i32
    scf.if %12 {
      %c0_16 = arith.constant 0 : index
      %c0_17 = arith.constant 0 : index
      %19 = vector.load %arg6[%c0_16, %c0_17] : memref<1x256xf32, #tpu.memory_space<vmem>>, vector<1x256xf32>
      %20 = vector.shape_cast %19 : vector<1x256xf32> to vector<1x256xf32>
      %21 = vector.broadcast %20 : vector<1x256xf32> to vector<16x256xf32>
      %c0_18 = arith.constant 0 : index
      %c0_19 = arith.constant 0 : index
      %22 = vector.load %arg8[%c0_18, %c0_19] : memref<16x256xf32, #tpu.memory_space<vmem>>, vector<16x256xf32>
      tpu.vector_store %arg8[%c0_18, %c0_19], %21 {strides = array<i32>} : memref<16x256xf32, #tpu.memory_space<vmem>>, vector<16x256xf32>,
    } else {
    }
    %c0_9 = arith.constant 0 : index
    %c0_10 = arith.constant 0 : index
    %13 = vector.load %arg8[%c0_9, %c0_10] : memref<16x256xf32, #tpu.memory_space<vmem>>, vector<16x256xf32>
    %14 = arith.truncf %7 : vector<16x128xf32> to vector<16x128xbf16>
    %c0_11 = arith.constant 0 : index
    %c0_12 = arith.constant 0 : index
    %15 = vector.load %arg5[%c0_11, %c0_12] : memref<128x256xbf16, #tpu.memory_space<vmem>>, vector<128x256xbf16>
    %cst_13 = arith.constant dense<0.000000e+00> : vector<16x256xf32>
    %16 = tpu.matmul %14, %15, %cst_13 {dimension_numbers = #tpu.dot_dimension_numbers<[1], [0], [0], [1], [0, 0, 1, 1], [], []>} : vector<16x128xbf16>, vector<128x256xbf16>, vector<16x256xf32> -> vector<16x256xf32>
    %17 = arith.addf %13, %16 : vector<16x256xf32>
    %c0_14 = arith.constant 0 : index
    %c0_15 = arith.constant 0 : index
    %18 = vector.load %arg8[%c0_14, %c0_15] : memref<16x256xf32, #tpu.memory_space<vmem>>, vector<16x256xf32>
    tpu.vector_store %arg8[%c0_14, %c0_15], %17 {strides = array<i32>} : memref<16x256xf32, #tpu.memory_space<vmem>>, vector<16x256xf32>,
    return
  }
  func.func @transform_0(%arg0: i32, %arg1: i32) -> (i32, i32) {
    %c0_i32 = arith.constant 0 : i32
    %c0_i32_0 = arith.constant 0 : i32
    return %arg0, %c0_i32 : i32, i32
  }
  func.func @transform_1(%arg0: i32, %arg1: i32) -> (i32, i32) {
    %c0_i32 = arith.constant 0 : i32
    %c0_i32_0 = arith.constant 0 : i32
    return %c0_i32, %arg1 : i32, i32
  }
  func.func @transform_2(%arg0: i32, %arg1: i32) -> (i32, i32) {
    %c0_i32 = arith.constant 0 : i32
    %c0_i32_0 = arith.constant 0 : i32
    return %c0_i32, %arg1 : i32, i32
  }
  func.func @transform_3(%arg0: i32, %arg1: i32) -> (i32, i32) {
    %c0_i32 = arith.constant 0 : i32
    %c0_i32_0 = arith.constant 0 : i32
    return %arg1, %c0_i32 : i32, i32
  }
  func.func @transform_4(%arg0: i32, %arg1: i32) -> (i32, i32) {
    %c0_i32 = arith.constant 0 : i32
    %c0_i32_0 = arith.constant 0 : i32
    %c0_i32_1 = arith.constant 0 : i32
    return %c0_i32, %c0_i32_0 : i32, i32
  }
  func.func @transform_5(%arg0: i32, %arg1: i32) -> (i32, i32) {
    %c0_i32 = arith.constant 0 : i32
    return %arg0, %arg1 : i32, i32
  }
  func.func @transform_6(%arg0: i32, %arg1: i32) -> (i32, i32) {
    %c0_i32 = arith.constant 0 : i32
    %c0_i32_0 = arith.constant 0 : i32
    return %arg0, %c0_i32 : i32, i32
  }
}

</mosaic_0001>

<bundles_post_ra>
// kernel: tpu_custom_call.1
= control target key start
LH: loop header
LB: loop body
LE: loop exit
PB: predicated region body
PF: predicated region fallthrough
CT: control target
= control target key end

     0   :  { %s2129_s0 = inlined_call_operand.hbm [shape: bf16[32,256], index: 0, kind: input, shape index: {}]   ;;  %s2130_s1 = inlined_call_operand.hbm [shape: bf16[256,512], index: 1, kind: input, shape index: {}]   ;;  %s2131_s2 = inlined_call_operand.vmem [shape: f32[1,512], index: 2, kind: input, shape index: {}]   ;;  %s2132_s3 = inlined_call_operand.hbm [shape: bf16[512,256], index: 3, kind: input, shape index: {}]   ;;  %s2133_s4 = inlined_call_operand.vmem [shape: f32[1,256], index: 4, kind: input, shape index: {}]   ;;  %s2134_s5 = inlined_call_operand.hbm [shape: bf16[32,512], index: 5, kind: output, shape index: {0}]   ;;  %s2135_s6 = inlined_call_operand.hbm [shape: f32[32,256], index: 6, kind: output, shape index: {1}]  }
   0x1   :  { %2157 = sst [smem:[#allocation27_spill]] %s2129_s0 }
   0x2   :  { %2158 = sst [smem:[#allocation28_spill]] %s2130_s1 }
   0x3   :  { %2159 = sst [smem:[#allocation29_spill]] %s2131_s2 }
   0x4   :  { %2160 = sst [smem:[#allocation30_spill]] %s2133_s4 }
   0x5   :  { %2161 = sst [smem:[#allocation31_spill]] %s2134_s5 }
   0x6   :  { %2162 = sst [smem:[#allocation32_spill]] %s2135_s6 }
   0x7   :  { %12 = vsyncpa [#allocation3], 0 }
   0x8   :  { %14 = vsyncpa [#allocation3 + $0x1], 0 }
   0x9   :  { %15 = vsyncpa [#allocation6], 0 }
   0xa   :  { %17 = vsyncpa [#allocation6 + $0x1], 0 }
   0xb   :  { %18 = vsyncpa [#allocation4], 0 }
   0xc   :  { %20 = vsyncpa [#allocation4 + $0x1], 0 }
   0xd   :  { %21 = vsyncpa [#allocation10], 0 }
   0xe   :  { %23 = vsyncpa [#allocation10 + $0x1], 0  ;;  %s1593_s21 = smov 0   ;;  %s1595_s22 = smov 0  }
   0xf   :  { %s1597_s23 = smov 0   ;;  %s1599_s24 = smov 0  }
  0x10   :  { %s1601_s25 = smov 0   ;;  %s1603_s26 = smov 0  }
  0x11   :  { %s1605_s27 = smov 0   ;;  %s1607_s28 = smov 0  }
  0x12   :  { %s1609_s29 = smov 0   ;;  %s1611_s30 = smov 0  }
  0x13   :  { %s1613_s7 = smov 0   ;;  %s1615_s8 = smov 0  }
  0x14   :  { %s1617_s9 = smov 0   ;;  %s1619_s10 = smov 0  }
  0x15 LB: > { %2163 = sst [smem:[#allocation15_spill]] %s1497_s23  ;;  %s2136_s11 = sadd.s32 1, %s1533_s8  ;;  %s1541_s10 = sphi %s1619_s10, %s29_s10   ;;  %s1537_s9 = sphi %s1617_s9, %s2222_s9   ;;  %s1533_s8 = sphi %s1615_s8, %s2231_s8   ;;  %s1529_s7 = sphi %s1613_s7, %s2220_s7   ;;  %s1525_s30 = sphi %s1611_s30, %s2230_s30   ;;  %s1521_s29 = sphi %s1609_s29, %s2229_s29   ;;  %s1517_s28 = sphi %s1607_s28, %s2228_s28   ;;  %s1513_s27 = sphi %s1605_s27, %s2227_s27   ;;  %s1509_s26 = sphi %s1603_s26, %s2217_s26   ;;  %s1505_s25 = sphi %s1601_s25, %s2226_s25   ;;  %s1501_s24 = sphi %s1599_s24, %s2225_s24   ;;  %s1497_s23 = sphi %s1597_s23, %s2215_s23   ;;  %s1493_s22 = sphi %s1595_s22, %s2224_s22   ;;  %s1489_s21 = sphi %s1593_s21, %s2223_s21  }
  0x16   : > { %2164 = sst [smem:[#allocation16_spill]] %s1509_s26  ;;  %p2141_p0 = scmp.eq.s32.totalorder %s1541_s10, 0 }
  0x17   : > { %2165 = sst [smem:[#allocation17_spill]] %s1521_s29  ;;  %p1667_p1 = scmp.ge.s32.totalorder %s2136_s11, 4 }
  0x18   : > { %2166 = sst [smem:[#allocation18_spill]] %s1525_s30  ;;  %p81_p2 = scmp.ne.s32.totalorder %s1509_s26, %s1505_s25 }
  0x19   : > { %2167 = sst [smem:[#allocation19_spill]] %s1529_s7  ;;  %p2140_p4 = scmp.lt.s32.totalorder %s1541_s10, 8 }
  0x1a   : > { %2168 = sst [smem:[#allocation20_spill]] %s1537_s9  ;;  %p83_p5 = por %p81_p2, %p2141_p0 }
  0x1b   : > { %s263_s14 = sand.u32 1, %s1541_s10   ;;  %s265_s15 = sand.u32 1, %s1509_s26  }
  0x1c   : > { %s1681_s16 = sshll.u32 %s265_s15, 7  ;;  %s980_s17 = sshll.u32 %s1533_s8, 6 }
  0x1d   : > { %s2170_s1 = sld [smem:[#allocation28_spill]]  ;;  %s267_s13 = scalar_lea.vmem [#allocation5], %s1681_s16 }
  0x1e   : > { %s273_s11 = sshll.u32 %s267_s13, 4  ;;  %p1692_p6 = pnand %p2140_p4, %p83_p5  ;;  %s1696_s11 = int_to_ptr.vmem [resolvable:$true] %s273_s11 }
  0x1f   : > { %s1699_s15 = scalar_lea.sflag [#allocation6], %s263_s14 }
  0x20   : > { %p2146_p9 = pneg %p1692_p6 }
  0x23   : > { %s1687_s20 = scalar_lea.hbm %s2170_s1, %s980_s17  ;;  %s1274_s19 = scalar_lea.hbm %s2170_s1, 8192 }
  0x24   : > { %s1269_s17 = scalar_lea.hbm %s1687_s20, 2048  ;;  %p1275_p12 = scmp.lt.u32.totalorder %s1687_s20, %s2170_s1 }
  0x25   : > { %p1270_p8 = scmp.ne.s32.totalorder %s1687_s20, %s1269_s17  ;;  %p1276_p13 = scmp.lt.u32.totalorder %s1274_s19, %s1269_s17 }
  0x26   : > { %p1278_p5 = scmp.lt.u32.totalorder %s1269_s17, %s1687_s20 }
  0x27   : > { %p1272_p10 = pnand %p2146_p9, %p1270_p8  ;;  %p1277_p2 = por %p1276_p13, %p1275_p12 }
  0x29   : > { %p1273_p11 = pneg %p1272_p10  ;;  %p1279_p4 = por %p1278_p5, %p1277_p2 }
  0x2b   : > { %p1280_p3 = pnand %p1279_p4, %p1273_p11 }
  0x2d   : > { %1283 = shalt.err (!%p1280_p3)
}
  0x2e   : > { %s1284_s14 = scalar_lea.vmem %s1696_s11, 2048  ;;  %s1543_s13 = smov [#allocation5]  }
  0x2f   : > { %p1285_p8 = scmp.ne.s32.totalorder %s1696_s11, %s1284_s14  ;;  %s1289_s18 = sshll.u32 %s1543_s13, 4  ;;  %s1290_s18 = int_to_ptr.vmem [resolvable:$false] %s1289_s18 }
  0x30   : > { %s1291_s5 = scalar_lea.vmem %s1290_s18, 4096  ;;  %p1292_p7 = scmp.lt.s32.totalorder %s1696_s11, %s1290_s18 }
  0x31   : > { %p1287_p10 = pnand %p1285_p8, %p2146_p9  ;;  %p1293_p12 = scmp.lt.s32.totalorder %s1291_s5, %s1284_s14 }
  0x33   : > { %p1288_p0 = pneg %p1287_p10  ;;  %p1294_p13 = por %p1293_p12, %p1292_p7 }
  0x35   : > { %p1295_p2 = pnand %p1294_p13, %p1288_p0 }
  0x37   : > { %1298 = shalt.err (!%p1295_p2)
}
  0x38   : > { %s1544_s7 = smov 256   ;;  %s1545_s17 = smov 64  }
  0x39   : > { %s1546_s19 = smov 4   ;;  %p309_p0 = scmp.lt.s32.totalorder %s1541_s10, 9 }
  0x3a   : > { %1091 = dma.hbm_to_vmem [thread:$0]  (!%p1692_p6), %s1687_s20, 2048, %s1696_s11, %s1699_s15, %s1544_s7, %s1545_s17, %s1546_s19  }
  0x3b   : > { %p2172_p3 = scmp.ge.s32.totalorder %s1541_s10, 1  ;;  %s1735_s13 = sadd.s32 4294967295, %s1541_s10  }
  0x3c   : > { %s972_s18 = sadd.s32 4294967294, %s1541_s10   ;;  %s2174_s5 = sadd.s32 1, %s1533_s8 }
  0x3d   : > { %p1730_p4 = pnand %p2172_p3, %p309_p0  ;;  %s2233_s5 = smov (%p1667_p1, %s2174_s5), 0 }
  0x3e   : > { %2175 = sst [smem:[#allocation21_spill]] %s2233_s5  ;;  %s41_s11 = sadd.s32 1, %s1537_s9 }
  0x3f   : > { %s2173_s14 = scalar_select %p1730_p4, 1, 0 }
  0x40   : > { %s48_s20 = sadd.s32 1, %s1521_s29  ;;  %s2235_s11 = smov (!%p1667_p1, %s41_s11), %s1537_s9 }
  0x41   : > { %p55_p7 = scmp.ne.s32.totalorder %s1521_s29, %s1517_s28  ;;  %p2148_p11 = scmp.ne.s32.totalorder %s1517_s28, %s1513_s27 }
  0x42   : > { %p43_p5 = scmp.ge.s32.totalorder %s2235_s11, 2  ;;  %p62_p8 = scmp.eq.s32.totalorder %s1735_s13, 0 }
  0x43   : > { %p2176_p10 = scmp.eq.s32.totalorder %s1541_s10, 0  ;;  %s71_s17 = ssub.s32 %s1533_s8, %s2233_s5 }
  0x44   : > { %s2237_s11 = smov (%p43_p5, %s2235_s11), 0  ;;  %p1770_p1 = por %p62_p8, %p2148_p11 }
  0x45   : > { %p1759_p12 = por %p2176_p10, %p55_p7  ;;  %2178 = sst [smem:[#allocation22_spill]] %s2237_s11 }
  0x46   : > { %s2179_s12 = scalar_select %p1770_p1, 1, 0 }
  0x47   : > { %p72_p13 = scmp.eq.s32.totalorder %s71_s17, 0  ;;  %s45_s19 = ssub.s32 %s1537_s9, %s2237_s11 }
  0x48   : > { %2180 = sst [smem:[#allocation23_spill]] %s2179_s12  ;;  %p2181_p2 = scmp.ne.s32.totalorder %s1505_s25, %s1501_s24 }
  0x49   : > { %p46_p3 = scmp.eq.s32.totalorder %s45_s19, 0  ;;  %s172_s5 = sor.u32 %s71_s17, %s45_s19 }
  0x4a   : > { %p1779_p0 = por %p2181_p2, %p62_p8  ;;  %s2183_s4 = sadd.s32 1, %s1509_s26 }
  0x4b   : > { %s1786_s2 = scalar_select %p72_p13, %s1509_s26, %s2183_s4  }
  0x4c   : > { %s2182_s1 = scalar_select %p1779_p0, 1, 0 }
  0x4d   : > { %2184 = sst [smem:[#allocation24_spill]] %s1786_s2  ;;  %p173_p5 = scmp.eq.s32.totalorder %s172_s5, 0 }
  0x4e   : > { %s1789_s30 = scalar_select %p46_p3, %s1521_s29, %s48_s20  }
  0x4f   : > { %s175_s12 = sadd.s32 1, %s1497_s23  ;;  %p185_p10 = scmp.ne.s32.totalorder %s1497_s23, %s1493_s22 }
  0x50   : > { %2185 = sst [smem:[#allocation25_spill]] %s1789_s30  ;;  %p186_p9 = scmp.eq.s32.totalorder %s1735_s13, 7 }
  0x51   : > { %s1796_s24 = scalar_select %p173_p5, %s1497_s23, %s175_s12  }
  0x52   : > { %p1798_p8 = por %p186_p9, %p185_p10  ;;  %p191_p2 = scmp.ne.s32.totalorder %s1493_s22, %s1489_s21 }
  0x53   : > { %2186 = sst [smem:[#allocation26_spill]] %s1796_s24  ;;  %p192_p11 = scmp.eq.s32.totalorder %s972_s18, 7 }
  0x54   : > { %s2187_s11 = scalar_select %p1798_p8, 1, 0 }
  0x55   : > { %p1807_p0 = por %p186_p9, %p55_p7  ;;  %s241_s20 = sand.u32 1, %s1521_s29  }
  0x56   : > { %s1040_s5 = sshll.u32 %s1537_s9, 8  ;;  %p1813_p13 = por %p192_p11, %p191_p2 }
  0x57   : > { %s2188_s4 = scalar_select %p1807_p0, 1, 0 }
  0x58   : > { %s2189_s17 = scalar_select %p1813_p13, 1, 0 }
  0x59   : > { %p2190_p3 = scmp.ne.s32.totalorder %s1517_s28, %s1513_s27  ;;  %s975_s19 = sshll.u32 %s241_s20, 4 }
  0x5a   : > { %s2192_s0 = sld [smem:[#allocation27_spill]]  ;;  %s245_s9 = scalar_lea.vmem [#allocation2], %s975_s19 }
  0x5b   : > { %p1820_p5 = por %p192_p11, %p2190_p3  ;;  %s253_s29 = sshll.u32 %s245_s9, 4  ;;  %s1837_s29 = int_to_ptr.vmem [resolvable:$true] %s253_s29 }
  0x5c   : > { %p2193_p9 = scmp.lt.s32.totalorder %s1541_s10, 8  ;;  %s1839_s24 = scalar_lea.sflag [#allocation3], %s241_s20 }
  0x5d   : > { %s2191_s12 = scalar_select %p1820_p5, 1, 0 }
  0x5e   : > { %p1833_p7 = pnand %p2193_p9, %p1759_p12 }
  0x60   : > { %s1827_s18 = scalar_lea.hbm %s2192_s0, %s1040_s5  ;;  %p1301_p10 = pneg %p1833_p7 }
  0x61   : > { %s1299_s2 = scalar_lea.hbm %s1827_s18, 256  ;;  %s1304_s7 = scalar_lea.hbm %s2192_s0, 512 }
  0x62   : > { %p1300_p11 = scmp.ne.s32.totalorder %s1827_s18, %s1299_s2  ;;  %p1305_p12 = scmp.lt.u32.totalorder %s1827_s18, %s2192_s0 }
  0x63   : > { %p1306_p9 = scmp.lt.u32.totalorder %s1304_s7, %s1299_s2  ;;  %p1308_p13 = scmp.lt.u32.totalorder %s1299_s2, %s1827_s18 }
  0x64   : > { %p1302_p2 = pnand %p1301_p10, %p1300_p11 }
  0x65   : > { %p1307_p5 = por %p1306_p9, %p1305_p12 }
  0x66   : > { %p1303_p3 = pneg %p1302_p2 }
  0x67   : > { %p1309_p0 = por %p1308_p13, %p1307_p5 }
  0x69   : > { %p1310_p8 = pnand %p1309_p0, %p1303_p3 }
  0x6b   : > { %1313 = shalt.err (!%p1310_p8)
}
  0x6c   : > { %s1314_s20 = scalar_lea.vmem %s1837_s29, 256  ;;  %s1547_s30 = smov [#allocation2]  }
  0x6d   : > { %p1315_p11 = scmp.ne.s32.totalorder %s1837_s29, %s1314_s20  ;;  %s1319_s9 = sshll.u32 %s1547_s30, 4  ;;  %s1320_s9 = int_to_ptr.vmem [resolvable:$false] %s1319_s9 }
  0x6e   : > { %s1321_s5 = scalar_lea.vmem %s1320_s9, 512  ;;  %p1322_p4 = scmp.lt.s32.totalorder %s1837_s29, %s1320_s9 }
  0x6f   : > { %p1317_p2 = pnand %p1315_p11, %p1301_p10  ;;  %p1323_p12 = scmp.lt.s32.totalorder %s1321_s5, %s1314_s20 }
  0x71   : > { %p1318_p1 = pneg %p1317_p2  ;;  %p1324_p9 = por %p1323_p12, %p1322_p4 }
  0x73   : > { %p1325_p13 = pnand %p1324_p9, %p1318_p1 }
  0x75   : > { %1328 = shalt.err (!%p1325_p13)
}
  0x76   : > { %s1548_s2 = smov 128   ;;  %s1549_s7 = smov 8  }
  0x77   : > { %1088 = dma.hbm_to_vmem [thread:$0]  (!%p1833_p7), %s1827_s18, 256, %s1837_s29, %s1839_s24, %s1548_s2, %s1548_s2, %s1549_s7  }
  0x78   : > { %s1042_s19 = sshll.u32 %s1533_s8, 11  ;;  %s293_s5 = scalar_lea.vmem [#allocation7], %s1681_s16 }
  0x79   : > { %s1874_s9 = scalar_lea.hbm %s2132_s3, %s1042_s19  ;;  %s301_s0 = sshll.u32 %s293_s5, 4  ;;  %s1877_s0 = int_to_ptr.vmem [resolvable:$true] %s301_s0 }
  0x7a   : > { %s1329_s23 = scalar_lea.hbm %s1874_s9, 2048  ;;  %p2195_p1 = pneg %p1692_p6 }
  0x7b   : > { %p1330_p4 = scmp.ne.s32.totalorder %s1874_s9, %s1329_s23  ;;  %s1334_s24 = scalar_lea.hbm %s2132_s3, 8192 }
  0x7c   : > { %p1335_p5 = scmp.lt.u32.totalorder %s1874_s9, %s2132_s3  ;;  %p1336_p7 = scmp.lt.u32.totalorder %s1334_s24, %s1329_s23 }
  0x7d   : > { %p1332_p0 = pnand %p1330_p4, %p2195_p1  ;;  %p1338_p3 = scmp.lt.u32.totalorder %s1329_s23, %s1874_s9 }
  0x7e   : > { %p1337_p10 = por %p1336_p7, %p1335_p5 }
  0x7f   : > { %p1333_p8 = pneg %p1332_p0 }
  0x80   : > { %p1339_p11 = por %p1338_p3, %p1337_p10 }
  0x82   : > { %p1340_p2 = pnand %p1339_p11, %p1333_p8 }
  0x84   : > { %1343 = shalt.err (!%p1340_p2)
}
  0x85   : > { %s1344_s16 = scalar_lea.vmem %s1877_s0, 2048  ;;  %p2196_p9 = pmov %p2195_p1 }
  0x86   : > { %p1345_p12 = scmp.ne.s32.totalorder %s1877_s0, %s1344_s16  ;;  %s1550_s30 = smov [#allocation7]  }
  0x87   : > { %s1349_s20 = sshll.u32 %s1550_s30, 4  ;;  %s1350_s20 = int_to_ptr.vmem [resolvable:$false] %s1349_s20 }
  0x88   : > { %p1347_p13 = pnand %p1345_p12, %p2196_p9  ;;  %s1351_s5 = scalar_lea.vmem %s1350_s20, 4096 }
  0x89   : > { %p1352_p1 = scmp.lt.s32.totalorder %s1877_s0, %s1350_s20  ;;  %p1353_p0 = scmp.lt.s32.totalorder %s1351_s5, %s1344_s16 }
  0x8a   : > { %p1348_p4 = pneg %p1347_p13 }
  0x8b   : > { %p1354_p5 = por %p1353_p0, %p1352_p1 }
  0x8d   : > { %p1355_p7 = pnand %p1354_p5, %p1348_p4 }
  0x8f   : > { %1358 = shalt.err (!%p1355_p7)
}
  0x90   : > { %1094 = dma.hbm_to_vmem [thread:$0]  (!%p1692_p6), %s1874_s9, 2048, %s1877_s0, %s1699_s15, %s1548_s2, %s1548_s2, %s1549_s7  }
  0x91   : > { %p2197_p8 = scmp.ne.s32.totalorder %s2173_s14, 0 }
  0x92   : > { %s2198_s23 = sld [smem:[#allocation23_spill]] (!%p2197_p8)  ;;  %s1909_s26 = sand.u32 (!%p2197_p8), 1, %s1517_s28  }
  0x93   : > { %313 = sbr.rel (%p2197_p8) target bundleno = 682 (0x2aa), region = 40  ;;  %s986_s29 = sshll.u32 (!%p2197_p8), %s1909_s26, 4 }
  0x94   : > { %s316_s24 = scalar_lea.sflag (!%p2197_p8), [#allocation3], %s1909_s26  ;;  %s1913_s18 = scalar_lea.vmem (!%p2197_p8), [#allocation2], %s986_s29 }
  0x98   : > { %p2199_p10 = scmp.ne.s32.totalorder (!%p2197_p8), %s2198_s23, 0 }
  0x9a   : > { %1472 = dma.done.wait (%p2199_p10), %s316_s24, 256  }
  0x9b   : > { %1474 = vsyncadd (%p2199_p10), %s316_s24, 4294967040  ;;  %s324_s0 = sand.u32 1, %s1735_s13   ;;  %s326_s6 = sand.u32 1, %s1505_s25  }
  0x9c   : > { %s1921_s15 = sshll.u32 %s326_s6, 7  ;;  %s325_s14 = scalar_lea.sflag [#allocation6], %s324_s0 }
  0x9d   : > { %s1924_s2 = scalar_lea.vmem [#allocation5], %s1921_s15  ;;  %p2200_p6 = scmp.ne.s32.totalorder %s2182_s1, 0 }
  0x9f   : > { %1476 = dma.done.wait (%p2200_p6), %s325_s14, 4096  }
  0xa0   : > { %1478 = vsyncadd (%p2200_p6), %s325_s14, 4294963200  ;;  %s990_s13 = sshll.u32 %s1909_s26, 5  ;;  %v1226_v0 = vld [vmem:[%s1924_s2 + $0x40] sm:$0xff]   ;;  %v1228_v2 = vld [vmem:[%s1924_s2 + $0x48] sm:$0xff]   ;;  %s2201_s1 = sld [smem:[#allocation18_spill]] }
  0xa1   : > { %v1227_v1 = vld [vmem:[%s1924_s2] sm:$0xff]   ;;  %1053 = vmatprep.subr.bf16.mxu0 %v1226_v0  ;;  %v1229_v3 = vld [vmem:[%s1924_s2 + $0x8] sm:$0xff]   ;;  %v1230_v4 = vld [vmem:[%s1924_s2 + $0x50] sm:$0xff]   ;;  %s2202_s16 = sld [smem:[#allocation29_spill]]  ;;  %s374_s20 = sand.u32 1, %s1493_s22  }
  0xa2   : > { %1054 = vmatpush3.bf16.msra.mxu0 %v1227_v1  ;;  %v1231_v5 = vld [vmem:[%s1924_s2 + $0x10] sm:$0xff]   ;;  %v1232_v6 = vld [vmem:[%s1924_s2 + $0x58] sm:$0xff]   ;;  %v1234_v8 = vld [vmem:[%s1924_s2 + $0x60] sm:$0xff]   ;;  %s1957_s5 = sshll.u32 %s374_s20, 3  ;;  %s1963_s29 = scalar_lea.vmem [#allocation7], %s1921_s15 }
  0xa3   : > { %1055 = vmatprep.subr.bf16.mxu0 %v1228_v2  ;;  %v1233_v7 = vld [vmem:[%s1924_s2 + $0x18] sm:$0xff]   ;;  %v1235_v9 = vld [vmem:[%s1924_s2 + $0x20] sm:$0xff]   ;;  %v1236_v10 = vld [vmem:[%s1924_s2 + $0x68] sm:$0xff]   ;;  %s376_s23 = scalar_lea.vmem [#allocation8], %s1957_s5  ;;  %s1967_s24 = scalar_lea.vmem [#allocation9], %s990_s13 }
  0xa4   : > { %v1244_v11 = vld [vmem:[%s1913_s18 + $0x4] ss:$8 sps:$4 sm:$0xff]   ;;  %v1242_v17 = vld [vmem:[%s1913_s18] ss:$8 sps:$4 sm:$0xff]  }
  0xa5   : > { %v1237_v12 = vld [vmem:[%s1924_s2 + $0x28] sm:$0xff]   ;;  %571 = vmatprep.mubr.bf16.mxu0 %v1244_v11  ;;  %v1238_v13 = vld [vmem:[%s1924_s2 + $0x70] sm:$0xff]   ;;  %v1240_v15 = vld [vmem:[%s1924_s2 + $0x78] sm:$0xff]  }
  0xa6   : > { %1056 = vmatpush3.bf16.msra.mxu0 %v1229_v3  ;;  %v1239_v14 = vld [vmem:[%s1924_s2 + $0x30] sm:$0xff]   ;;  %v1241_v16 = vld [vmem:[%s1924_s2 + $0x38] sm:$0xff]   ;;  %p385_p3 = scmp.lt.s32.totalorder %s2201_s1, 3  ;;  %p1012_p11 = scmp.ne.s32.totalorder %s2201_s1, 0 }
  0xa7   : > { %1057 = vmatprep.subr.bf16.mxu0 %v1230_v4  ;;  %v598_v30 = vlaneseq (!%p1012_p11)  ;;  %s2203_s6 = sld [smem:[#allocation30_spill]] (!%p1012_p11) }
  0xa8   : > { %s386_s7 = scalar_select %p385_p3, %s2201_s1, 3 }
  0xa9   : > { %v599_v31 = vshrl.u32 (!%p1012_p11), %v598_v30, 7 }
  0xaa   : > { %1058 = vmatpush3.bf16.msra.mxu0 %v1231_v5  ;;  %s387_s30 = scalar_lea.vmem %s2202_s16, %s386_s7 }
  0xab   : > { %1059 = vmatprep.subr.bf16.mxu0 %v1232_v6  ;;  %v991_v19 = vld [vmem:[%s387_s30] ss:$0 sm:$0xff]  ;;  %v600_v33 = vsub.s32 (!%p1012_p11), 0, %v599_v31  ;;  %v604_v34 = vsub.s32 (!%p1012_p11), 1, %v599_v31 }
  0xad   : > { %v596_v32 = vld [vmem:[%s2203_s6] sm:$0x3] (!%p1012_p11) }
  0xae   : > { %1060 = vmatpush3.bf16.msra.mxu0 %v1233_v7  ;;  %v601_v35 = vrot.slane (!%p1012_p11), %v596_v32, %v600_v33  ;;  %v605_v36 = vrot.slane (!%p1012_p11), %v596_v32, %v604_v34 }
  0xaf   : > { %1061 = vmatprep.subr.bf16.mxu0 %v1234_v8 }
  0xb0   : > { %608 = vst [vmem:[%s1967_s24] sm:$0xff] (!%p1012_p11), %v601_v35  ;;  %610 = vst [vmem:[%s1967_s24 + $0x10] sm:$0xff] (!%p1012_p11), %v601_v35 }
  0xb1   : > { %609 = vst [vmem:[%s1967_s24 + $0x8] sm:$0xff] (!%p1012_p11), %v605_v36  ;;  %611 = vst [vmem:[%s1967_s24 + $0x18] sm:$0xff] (!%p1012_p11), %v605_v36 }
  0xb2   : > { %1062 = vmatpush3.bf16.msra.mxu0 %v1235_v9 }
  0xb3   : > { %1063 = vmatprep.subr.bf16.mxu0 %v1236_v10 }
  0xb6   : > { %1064 = vmatpush3.bf16.msra.mxu0 %v1237_v12 }
  0xb7   : > { %1065 = vmatprep.subr.bf16.mxu0 %v1238_v13 }
  0xba   : > { %1066 = vmatpush3.bf16.msra.mxu0 %v1239_v14 }
  0xbb   : > { %1067 = vmatprep.subr.bf16.mxu0 %v1240_v15 }
  0xbe   : > { %1068 = vmatpush3.bf16.msra.mxu0 %v1241_v16 }
  0xc1   : > { %572 = vmatmul.mubr.bf16.vlgmr.msra.gmra.mrb[0].mxu0 %v1242_v17 }
 0x194   : > { %v1069_v18 = vpop.f32.mrb[0].mxu0 }
 0x195   : > { %v1070_v20 = vpop.f32.mrb[1].mxu0 }
 0x196   : > { %v1071_v21 = vadd.f32 %v1070_v20, %v1069_v18  ;;  %v1072_v22 = vpop.f32.mrb[2].mxu0 }
 0x197   : > { %v1073_v23 = vpop.f32.mrb[3].mxu0 }
 0x198   : > { %v574_v24 = vadd.f32 %v1071_v21, %v991_v19  ;;  %v1074_v25 = vadd.f32 %v1073_v23, %v1072_v22 }
 0x19a   : > { %v577_v26 = vadd.f32 %v1074_v25, %v991_v19  ;;  %v580_v27 = vmax.f32 %v574_v24, 0.0  ;;  %595 = sbr.rel (%p1012_p11) target bundleno = 417 (0x1a1), region = 56 }
 0x19c   : > { %v581_v28 = vmax.f32 %v577_v26, 0.0 }
 0x19e   : > { %v582_v29 = vpack.c.bf16 %v581_v28, %v580_v27 }
 0x1a0   : > { %1052 = vst [vmem:[%s376_s23] sm:$0xff] %v582_v29  }
 0x1a1 PF: > { %v1245_v37 = vld [vmem:[%s1963_s29 + $0x4] ss:$8 sps:$4 sm:$0xff]   ;;  %v1247_v38 = vld [vmem:[%s1963_s29] ss:$8 sps:$4 sm:$0xff]   ;;  %v1551_v39 = vmov 0   ;;  %s2204_s15 = sld [smem:[#allocation19_spill]] }
 0x1a2   : > { %744 = vmatprep.mubr.bf16.mxu1 %v1551_v39  ;;  %712 = vmatprep.subr.bf16.mxu1 %v1245_v37  ;;  %v1248_v40 = vld [vmem:[%s1963_s29 + $0x14] ss:$8 sps:$4 sm:$0xff]   ;;  %v1250_v41 = vld [vmem:[%s1963_s29 + $0x10] ss:$8 sps:$4 sm:$0xff]   ;;  %v1251_v42 = vld [vmem:[%s1963_s29 + $0x24] ss:$8 sps:$4 sm:$0xff]  }
 0x1a3   : > { %713 = vmatpush1.bf16.msra.mxu1 %v1247_v38  ;;  %v1253_v43 = vld [vmem:[%s1963_s29 + $0x20] ss:$8 sps:$4 sm:$0xff]   ;;  %v1254_v44 = vld [vmem:[%s1963_s29 + $0x34] ss:$8 sps:$4 sm:$0xff]   ;;  %v1256_v45 = vld [vmem:[%s1963_s29 + $0x30] ss:$8 sps:$4 sm:$0xff]  }
 0x1a4   : > { %714 = vmatprep.subr.bf16.mxu1 %v1248_v40  ;;  %v1257_v46 = vld [vmem:[%s1963_s29 + $0x44] ss:$8 sps:$4 sm:$0xff]   ;;  %v1259_v47 = vld [vmem:[%s1963_s29 + $0x40] ss:$8 sps:$4 sm:$0xff]   ;;  %s2205_s14 = sld [smem:[#allocation18_spill]]  ;;  %s784_s7 = sshll.u32 %s376_s23, 4  ;;  %s2002_s7 = int_to_ptr.vmem [resolvable:$true] %s784_s7 }
 0x1a5   : > { %v1260_v48 = vld [vmem:[%s1963_s29 + $0x54] ss:$8 sps:$4 sm:$0xff]   ;;  %v1262_v49 = vld [vmem:[%s1963_s29 + $0x50] ss:$8 sps:$4 sm:$0xff]   ;;  %v1263_v50 = vld [vmem:[%s1963_s29 + $0x64] ss:$8 sps:$4 sm:$0xff]  }
 0x1a6   : > { %v1265_v51 = vld [vmem:[%s1963_s29 + $0x60] ss:$8 sps:$4 sm:$0xff]   ;;  %v1266_v52 = vld [vmem:[%s1963_s29 + $0x74] ss:$8 sps:$4 sm:$0xff]   ;;  %v1268_v53 = vld [vmem:[%s1963_s29 + $0x70] ss:$8 sps:$4 sm:$0xff]  }
 0x1a7   : > { %715 = vmatpush1.bf16.msra.mxu1 %v1250_v41  ;;  %s1045_s2 = sshll.u32 %s2204_s15, 3  ;;  %s2206_s16 = sld [smem:[#allocation31_spill]] }
 0x1a8   : > { %716 = vmatprep.subr.bf16.mxu1 %v1251_v42  ;;  %s2006_s29 = scalar_lea.sflag [#allocation4], %s374_s20  ;;  %s1359_s18 = scalar_lea.vmem %s2002_s7, 128 }
 0x1a9   : > { %p1360_p2 = scmp.ne.s32.totalorder %s2002_s7, %s1359_s18  ;;  %p2207_p12 = scmp.ne.s32.totalorder %s2187_s11, 0 }
 0x1aa   : > { %s781_s13 = sadd.s32 %s2205_s14, %s1045_s2  ;;  %s1552_s5 = smov [#allocation8]  }
 0x1ab   : > { %717 = vmatpush1.bf16.msra.mxu1 %v1253_v43  ;;  %s1033_s1 = sshll.u32 %s781_s13, 6  ;;  %p1361_p9 = pnand %p1360_p2, %p2207_p12 }
 0x1ac   : > { %718 = vmatprep.subr.bf16.mxu1 %v1254_v44  ;;  %s1363_s23 = sshll.u32 %s1552_s5, 4  ;;  %s1364_s23 = int_to_ptr.vmem [resolvable:$false] %s1363_s23 }
 0x1ad   : > { %s2000_s30 = scalar_lea.hbm %s2206_s16, %s1033_s1  ;;  %p1362_p13 = pneg %p1361_p9 }
 0x1ae   : > { %s1365_s0 = scalar_lea.vmem %s1364_s23, 256  ;;  %p1366_p4 = scmp.lt.s32.totalorder %s2002_s7, %s1364_s23 }
 0x1af   : > { %719 = vmatpush1.bf16.msra.mxu1 %v1256_v45  ;;  %p1367_p1 = scmp.lt.s32.totalorder %s1365_s0, %s1359_s18 }
 0x1b0   : > { %720 = vmatprep.subr.bf16.mxu1 %v1257_v46 }
 0x1b1   : > { %p1368_p0 = por %p1367_p1, %p1366_p4 }
 0x1b3   : > { %721 = vmatpush1.bf16.msra.mxu1 %v1259_v47  ;;  %p1369_p5 = pnand %p1368_p0, %p1362_p13 }
 0x1b4   : > { %722 = vmatprep.subr.bf16.mxu1 %v1260_v48 }
 0x1b7   : > { %723 = vmatpush1.bf16.msra.mxu1 %v1262_v49 }
 0x1b8   : > { %724 = vmatprep.subr.bf16.mxu1 %v1263_v50 }
 0x1bb   : > { %725 = vmatpush1.bf16.msra.mxu1 %v1265_v51 }
 0x1bc   : > { %726 = vmatprep.subr.bf16.mxu1 %v1266_v52 }
 0x1bf   : > { %727 = vmatpush1.bf16.msra.mxu1 %v1268_v53 }
 0x1c2   : > { %745 = vmatmul.mubr.bf16.vlgmr.msra.gmra.mrb[0].mxu1 %v582_v29 }
 0x1c3   : > { %1372 = shalt.err (!%p1369_p5)
}
 0x1c4   : > { %s1373_s20 = scalar_lea.hbm %s2000_s30, 128  ;;  %s1377_s2 = scalar_lea.hbm %s2206_s16, 1024 }
 0x1c5   : > { %p1374_p7 = scmp.ne.s32.totalorder %s2000_s30, %s1373_s20  ;;  %p1378_p6 = scmp.lt.u32.totalorder %s2000_s30, %s2206_s16 }
 0x1c6   : > { %p1379_p3 = scmp.lt.u32.totalorder %s1377_s2, %s1373_s20  ;;  %p1381_p2 = scmp.lt.u32.totalorder %s1373_s20, %s2000_s30 }
 0x1c7   : > { %p1375_p8 = pnand %p1374_p7, %p2207_p12 }
 0x1c8   : > { %p1380_p11 = por %p1379_p3, %p1378_p6 }
 0x1c9   : > { %p1376_p10 = pneg %p1375_p8 }
 0x1ca   : > { %p1382_p9 = por %p1381_p2, %p1380_p11 }
 0x1cc   : > { %p1383_p13 = pnand %p1382_p9, %p1376_p10 }
 0x1ce   : > { %1386 = shalt.err (!%p1383_p13)
}
 0x1cf   : > { %s1553_s9 = smov 64   ;;  %s1554_s19 = smov 256   ;;  %v612_v54 = vld [vmem:[%s1967_s24] sm:$0xff]  ;;  %v613_v55 = vld [vmem:[%s1967_s24 + $0x8] sm:$0xff]  ;;  %v614_v57 = vld [vmem:[%s1967_s24 + $0x10] sm:$0xff] }
 0x1d0   : > { %s1555_s18 = smov 4   ;;  %s1047_s5 = sshll.u32 %s2204_s15, 9  ;;  %v615_v60 = vld [vmem:[%s1967_s24 + $0x18] sm:$0xff] }
 0x1d1   : > { %1081 = dma.vmem_to_hbm [thread:$0]  (%p2207_p12), %s2002_s7, 128, %s2000_s30, %s2006_s29, %s1553_s9, %s1554_s19, %s1555_s18  }
 0x1d2   : > { %s801_s23 = sshll.u32 %s1967_s24, 4  ;;  %s2208_s30 = sld [smem:[#allocation32_spill]]  ;;  %s2044_s23 = int_to_ptr.vmem [resolvable:$true] %s801_s23 }
 0x1d3   : > { %s769_s15 = scalar_lea.sflag [#allocation10], %s1909_s26  ;;  %s1387_s20 = scalar_lea.vmem %s2044_s23, 512 }
 0x1d4   : > { %p1388_p12 = scmp.ne.s32.totalorder %s2044_s23, %s1387_s20  ;;  %p2210_p4 = scmp.ne.s32.totalorder %s2188_s4, 0 }
 0x1d5   : > { %s1556_s6 = smov [#allocation9]  }
 0x1d6   : > { %p1389_p1 = pnand %p1388_p12, %p2210_p4  ;;  %s1391_s14 = sshll.u32 %s1556_s6, 4  ;;  %s1392_s14 = int_to_ptr.vmem [resolvable:$false] %s1391_s14 }
 0x1d7   : > { %s1393_s2 = scalar_lea.vmem %s1392_s14, 1024  ;;  %p1394_p5 = scmp.lt.s32.totalorder %s2044_s23, %s1392_s14 }
 0x1d8   : > { %s2209_s0 = smov %s2208_s30  ;;  %s2041_s29 = scalar_lea.hbm %s2208_s30, %s1047_s5 }
 0x1d9   : > { %p1390_p0 = pneg %p1389_p1  ;;  %p1395_p7 = scmp.lt.s32.totalorder %s1393_s2, %s1387_s20 }
 0x1db   : > { %p1396_p8 = por %p1395_p7, %p1394_p5 }
 0x1dd   : > { %p1397_p10 = pnand %p1396_p8, %p1390_p0 }
 0x295   : > { %v746_v56 = vpop.f32.mrb[0].mxu1 }
 0x296   : > { %v755_v58 = vadd.f32 %v746_v56, %v612_v54  ;;  %v748_v59 = vpop.f32.mrb[1].mxu1 }
 0x297   : > { %v756_v61 = vadd.f32 %v748_v59, %v613_v55  ;;  %v750_v62 = vpop.f32.mrb[2].mxu1 }
 0x298   : > { %759 = vst [vmem:[%s1967_s24] sm:$0xff] %v755_v58  ;;  %v757_v63 = vadd.f32 %v750_v62, %v614_v57  ;;  %v752_v0 = vpop.f32.mrb[3].mxu1 }
 0x299   : > { %760 = vst [vmem:[%s1967_s24 + $0x8] sm:$0xff] %v756_v61  ;;  %v758_v1 = vadd.f32 %v752_v0, %v615_v60 }
 0x29a   : > { %761 = vst [vmem:[%s1967_s24 + $0x10] sm:$0xff] %v757_v63 }
 0x29b   : > { %762 = vst [vmem:[%s1967_s24 + $0x18] sm:$0xff] %v758_v1 }
 0x29c   : > { %1400 = shalt.err (!%p1397_p10)
}
 0x29d   : > { %s1401_s24 = scalar_lea.hbm %s2041_s29, 512  ;;  %s1405_s9 = scalar_lea.hbm %s2209_s0, 1024 }
 0x29e   : > { %p1402_p6 = scmp.ne.s32.totalorder %s2041_s29, %s1401_s24  ;;  %p1406_p2 = scmp.lt.u32.totalorder %s2041_s29, %s2209_s0 }
 0x29f   : > { %p1407_p9 = scmp.lt.u32.totalorder %s1405_s9, %s1401_s24  ;;  %p1409_p12 = scmp.lt.u32.totalorder %s1401_s24, %s2041_s29 }
 0x2a0   : > { %p1403_p3 = pnand %p1402_p6, %p2210_p4 }
 0x2a1   : > { %p1408_p13 = por %p1407_p9, %p1406_p2 }
 0x2a2   : > { %p1404_p11 = pneg %p1403_p3 }
 0x2a3   : > { %p1410_p1 = por %p1409_p12, %p1408_p13 }
 0x2a5   : > { %p1411_p0 = pnand %p1410_p1, %p1404_p11 }
 0x2a7   : > { %1414 = shalt.err (!%p1411_p0)
}
 0x2a8   : > { %s1557_s11 = smov 16  }
 0x2a9   : > { %1082 = dma.vmem_to_hbm [thread:$0]  (%p2210_p4), %s2044_s23, 512, %s2041_s29, %s769_s15, %s1554_s19, %s1554_s19, %s1557_s11  }
 0x2aa PF: > { %p1103_p5 = scmp.ge.s32.totalorder %s1541_s10, 2  ;;  %s816_s7 = sand.u32 1, %s1489_s21  }
 0x2ab   : > { %p2211_p7 = scmp.ne.s32.totalorder %s2189_s17, 0  ;;  %s817_s30 = scalar_lea.sflag [#allocation4], %s816_s7 }
 0x2ad   : > { %p1096_p8 = pnand %p1103_p5, %p2211_p7 }
 0x2af   : > { %1480 = dma.done.wait (!%p1096_p8), %s817_s30, 128  }
 0x2b0   : > { %1482 = vsyncadd (!%p1096_p8), %s817_s30, 4294967168  ;;  %s825_s4 = sand.u32 1, %s1513_s27   ;;  %p2212_p10 = scmp.ne.s32.totalorder %s2191_s12, 0 }
 0x2b1   : > { %s826_s26 = scalar_lea.sflag [#allocation10], %s825_s4 }
 0x2b2   : > { %p1099_p6 = pnand %p1103_p5, %p2212_p10 }
 0x2b4   : > { %1484 = dma.done.wait (!%p1099_p6), %s826_s26, 512  }
 0x2b5   : > { %1486 = vsyncadd (!%p1099_p6), %s826_s26, 4294966784  ;;  %s29_s10 = sadd.s32 1, %s1541_s10   ;;  %s2214_s17 = sld [smem:[#allocation15_spill]] }
 0x2b6   : > { %p2082_p4 = scmp.ge.s32.totalorder %s29_s10, 10   ;;  %s2215_s23 = sld [smem:[#allocation26_spill]] }
 0x2b7   : > { %s2216_s29 = sld [smem:[#allocation16_spill]]  ;;  %s2217_s26 = sld [smem:[#allocation24_spill]] }
 0x2b8   : > { %s2218_s15 = sld [smem:[#allocation17_spill]]  ;;  %s2219_s20 = sld [smem:[#allocation25_spill]] }
 0x2b9   : > { %s2220_s7 = sld [smem:[#allocation20_spill]]  ;;  %s2221_s12 = sld [smem:[#allocation21_spill]] }
 0x2ba   : > { %s2222_s9 = sld [smem:[#allocation22_spill]]  ;;  %s2223_s21 = smov %s1493_s22 }
 0x2bb   : > { %s2224_s22 = smov %s2214_s17  ;;  %s2225_s24 = smov %s1505_s25 }
 0x2bc   : > { %s2227_s27 = smov %s1517_s28  ;;  %s2230_s30 = smov %s1533_s8 }
 0x2bd   : > { %s2226_s25 = smov %s2216_s29  ;;  %28 = sbr.rel (!%p2082_p4) target bundleno = 21 (0x15), region = 133 }
 0x2be   : > { %s2228_s28 = smov %s2218_s15  ;;  %s2229_s29 = smov %s2219_s20 }
 0x2bf   : > { %s2231_s8 = smov %s2221_s12 }
 0x2c4   :  { %831 = vsyncpa [#allocation3], 1 }
 0x2c5   :  { %833 = vsyncpa [#allocation3 + $0x1], 1 }
 0x2c6   :  { %834 = vsyncpa [#allocation6], 1 }
 0x2c7   :  { %836 = vsyncpa [#allocation6 + $0x1], 1 }
 0x2c8   :  { %837 = vsyncpa [#allocation4], 1 }
 0x2c9   :  { %839 = vsyncpa [#allocation4 + $0x1], 1 }
 0x2ca   :  { %840 = vsyncpa [#allocation10], 1 }
 0x2cb   :  { %842 = vsyncpa [#allocation10 + $0x1], 1 }

</bundles_post_ra>
